<compile_context>
chip_gen: v6e
topology: v6e:2x2x1
jax: 0.10.0
libtpu: 0.0.40
codegen_flags: <defaults>
</compile_context>

<pallas_src>
import functools

import jax
import jax.numpy as jnp
from jax.experimental import pallas as pl
from jax.experimental.pallas import tpu as pltpu


# ----------------------------------------------------------------------------
# Tiling helpers
# ----------------------------------------------------------------------------

def _round_up(x, m):
    return ((x + m - 1) // m) * m


def _vmem_limits():
    """Returns (vmem_limit_bytes for CompilerParams, per-kernel VMEM budget)."""
    try:
        phys = int(pltpu.get_tpu_info().vmem_capacity_bytes)
    except Exception:
        phys = 64 << 20  # conservative default (v7x-sized)
    if phys >= (128 << 20):          # v5e / v6e: 128 MiB physical VMEM
        return 64 << 20, 28 << 20
    return 32 << 20, 14 << 20        # v7x: 64 MiB physical, 32 MiB scoped default


def _min_row_tile(dtype):
    """Smallest sublane-aligned row tile for the given dtype packing."""
    itemsize = jnp.dtype(dtype).itemsize
    return {4: 8, 2: 16, 1: 32}.get(itemsize, 8)


_ROW_TILE_CANDIDATES = (512, 256, 128, 64, 32, 16, 8)


def _pick_row_tile(rows, dtype, per_row_bytes, fixed_bytes, budget):
    """Largest candidate row tile whose VMEM working set fits the budget."""
    min_t = _min_row_tile(dtype)
    cap = max(min_t, min(512, _round_up(rows, min_t)))
    for t in _ROW_TILE_CANDIDATES:
        if t < min_t or t > cap:
            continue
        if fixed_bytes + t * per_row_bytes <= budget:
            return t
    return min_t


def _pick_col_tile(n):
    """Lane-dense output-column tile (multiple of 128 when possible)."""
    if n < 128:
        return n                      # full-extent block (always legal)
    for t in (512, 256, 128):
        if t <= n:
            return t
    return 128


# ----------------------------------------------------------------------------
# Standalone LayerNorm kernel (used for arbitrary wrapped `fn`)
# ----------------------------------------------------------------------------

def _layernorm_kernel(x_ref, g_ref, b_ref, o_ref, *, eps):
    """LayerNorm over the last dim of a (TILE_ROWS, dim) block."""
    x = x_ref[...].astype(jnp.float32)                  # (T, D)
    mean = jnp.mean(x, axis=-1, keepdims=True)          # XLU reduce
    xc = x - mean
    var = jnp.mean(xc * xc, axis=-1, keepdims=True)     # biased variance
    inv = jax.lax.rsqrt(var + eps)                      # EUP
    y = xc * inv * g_ref[...].astype(jnp.float32) + b_ref[...].astype(jnp.float32)
    o_ref[...] = y.astype(o_ref.dtype)


def layer_norm(x, gamma, beta, *, eps=1e-5):
    """LayerNorm over the last dimension of x, Pallas TPU kernel."""
    orig_shape = x.shape
    dim = int(orig_shape[-1])
    rows = 1
    for s in orig_shape[:-1]:
        rows *= int(s)

    x2 = x.reshape(rows, dim)          # free relayout (contiguous merge)
    g2 = gamma.reshape(1, dim)
    b2 = beta.reshape(1, dim)

    vmem_limit, budget = _vmem_limits()
    x_it = jnp.dtype(x.dtype).itemsize
    # double-buffered input + output (wire dtype) + in-kernel f32 temporaries
    per_row = dim * (4 * x_it + 4)
    tile = _pick_row_tile(rows, x.dtype, per_row, 4 * dim * 4, budget)
    grid = (pl.cdiv(rows, tile),)

    cost = pl.CostEstimate(
        flops=8 * rows * dim,
        transcendentals=rows,
        bytes_accessed=2 * rows * dim * x_it + 2 * dim * 4,
    )

    out = pl.pallas_call(
        functools.partial(_layernorm_kernel, eps=eps),
        out_shape=jax.ShapeDtypeStruct((rows, dim), x.dtype),
        grid_spec=pltpu.PrefetchScalarGridSpec(
            num_scalar_prefetch=0,
            grid=grid,
            in_specs=[
                pl.BlockSpec((tile, dim), lambda i: (i, 0)),
                pl.BlockSpec((1, dim), lambda i: (0, 0)),
                pl.BlockSpec((1, dim), lambda i: (0, 0)),
            ],
            out_specs=pl.BlockSpec((tile, dim), lambda i: (i, 0)),
        ),
        compiler_params=pltpu.CompilerParams(
            dimension_semantics=("parallel",),
            vmem_limit_bytes=vmem_limit,
        ),
        cost_estimate=cost,
    )(x2, g2, b2)
    return out.reshape(orig_shape)


def pre_norm(x, gamma, beta, fn, *, eps=1e-5, **kwargs):
    """Generic PreNorm.forward: fn(LayerNorm(x), **kwargs) for arbitrary fn."""
    # TODO(synk): `fn` is an arbitrary wrapped module (attention / FFN / ...);
    # it has no generic Pallas equivalent, so only the LayerNorm runs in Pallas
    # here.  Use `pre_norm_dense_gelu` when fn's first op is a dense+GELU to
    # get the fused (single HBM pass) path.
    return fn(layer_norm(x, gamma, beta, eps=eps), **kwargs)


# ----------------------------------------------------------------------------
# Fused PreNorm + Dense + GELU kernel (the demo `fn` fused into the norm)
# ----------------------------------------------------------------------------

def _prenorm_dense_gelu_kernel(x_ref, g_ref, b_ref, w_ref, bias_ref, o_ref,
                               xn_ref, *, eps):
    """Grid = (row_tiles, n_tiles); K = dim is resident (not tiled).

    x_ref    : (T, D)   input rows
    g_ref    : (1, D)   gamma
    b_ref    : (1, D)   beta
    w_ref    : (D, Tn)  dense weight column tile
    bias_ref : (1, Tn)  dense bias tile
    o_ref    : (T, Tn)  output tile
    xn_ref   : (T, D)   f32 VMEM scratch holding the normalized rows
    """
    # Normalize once per row-tile (inner N axis reuses the scratch).
    @pl.when(pl.program_id(1) == 0)
    def _():
        x = x_ref[...].astype(jnp.float32)
        mean = jnp.mean(x, axis=-1, keepdims=True)
        xc = x - mean
        var = jnp.mean(xc * xc, axis=-1, keepdims=True)
        inv = jax.lax.rsqrt(var + eps)
        xn_ref[...] = (xc * inv) * g_ref[...].astype(jnp.float32) \
            + b_ref[...].astype(jnp.float32)

    # MXU matmul straight off the just-normalized block.
    lhs = xn_ref[...].astype(w_ref.dtype)          # no-op when w is f32
    y = jnp.dot(lhs, w_ref[...], preferred_element_type=jnp.float32)
    y = y + bias_ref[...].astype(jnp.float32)
    o_ref[...] = jax.nn.gelu(y).astype(o_ref.dtype)


def pre_norm_dense_gelu(x, gamma, beta, w, bias, *, eps=1e-5):
    """Fused PreNorm.forward when fn = GELU(Dense(.)): one HBM pass over x."""
    orig_shape = x.shape
    dim = int(orig_shape[-1])
    n_out = int(w.shape[-1])
    rows = 1
    for s in orig_shape[:-1]:
        rows *= int(s)

    x2 = x.reshape(rows, dim)
    g2 = gamma.reshape(1, dim)
    b2 = beta.reshape(1, dim)
    bias2 = bias.reshape(1, n_out)

    vmem_limit, budget = _vmem_limits()
    x_it = jnp.dtype(x.dtype).itemsize
    w_it = jnp.dtype(w.dtype).itemsize
    o_it = x_it

    tile_n = _pick_col_tile(n_out)
    # fixed: double-buffered weight/bias tiles + params
    fixed = 2 * dim * tile_n * w_it + 2 * tile_n * 4 + 4 * dim * 4
    # per row: double-buffered x + double-buffered out + f32 scratch + temps
    per_row = 2 * dim * x_it + 2 * tile_n * o_it + dim * 4 + max(dim, tile_n) * 4
    tile_r = _pick_row_tile(rows, x.dtype, per_row, fixed, budget)

    grid = (pl.cdiv(rows, tile_r), pl.cdiv(n_out, tile_n))

    cost = pl.CostEstimate(
        flops=2 * rows * dim * n_out + 8 * rows * dim,
        transcendentals=rows + rows * n_out,
        bytes_accessed=rows * dim * x_it + dim * n_out * w_it
        + rows * n_out * o_it + 2 * dim * 4 + n_out * 4,
    )

    out = pl.pallas_call(
        functools.partial(_prenorm_dense_gelu_kernel, eps=eps),
        out_shape=jax.ShapeDtypeStruct((rows, n_out), x.dtype),
        grid_spec=pltpu.PrefetchScalarGridSpec(
            num_scalar_prefetch=0,
            grid=grid,
            in_specs=[
                pl.BlockSpec((tile_r, dim), lambda i, j: (i, 0)),
                pl.BlockSpec((1, dim), lambda i, j: (0, 0)),
                pl.BlockSpec((1, dim), lambda i, j: (0, 0)),
                pl.BlockSpec((dim, tile_n), lambda i, j: (0, j)),
                pl.BlockSpec((1, tile_n), lambda i, j: (0, j)),
            ],
            out_specs=pl.BlockSpec((tile_r, tile_n), lambda i, j: (i, j)),
            scratch_shapes=[pltpu.VMEM((tile_r, dim), jnp.float32)],
        ),
        compiler_params=pltpu.CompilerParams(
            dimension_semantics=("parallel", "arbitrary"),
            vmem_limit_bytes=vmem_limit,
        ),
        cost_estimate=cost,
    )(x2, g2, b2, w, bias2)
    return out.reshape(orig_shape[:-1] + (n_out,))


# ----------------------------------------------------------------------------
# References + demo
# ----------------------------------------------------------------------------

def _layer_norm_reference(x, gamma, beta, eps=1e-5):
    xf = x.astype(jnp.float32)
    mean = jnp.mean(xf, axis=-1, keepdims=True)
    xc = xf - mean
    var = jnp.mean(xc * xc, axis=-1, keepdims=True)
    y = xc * jax.lax.rsqrt(var + eps) * gamma + beta
    return y.astype(x.dtype)


if __name__ == "__main__":
    # Small deterministic problem: batch=2, seq=64, dim=128 (lane-dense).
    b, n, dim = 2, 64, 128
    eps = 1e-5

    key = jax.random.PRNGKey(0)
    kx, kg, kb, kw, kwb = jax.random.split(key, 5)

    x = jax.random.normal(kx, (b, n, dim), dtype=jnp.float32)
    gamma = 1.0 + 0.1 * jax.random.normal(kg, (dim,), dtype=jnp.float32)
    beta = 0.1 * jax.random.normal(kb, (dim,), dtype=jnp.float32)

    # Demo `fn`: a small dense + GELU (the wrapped module in PreNorm is arbitrary).
    w_fn = jax.random.normal(kw, (dim, dim), dtype=jnp.float32) * 0.05
    b_fn = jax.random.normal(kwb, (dim,), dtype=jnp.float32) * 0.05

    def fn(y):
        return jax.nn.gelu(jnp.einsum("bnd,de->bne", y, w_fn) + b_fn)

    # --- Fused path (LayerNorm + dense + bias + GELU in one kernel) ---------
    out_fused = pre_norm_dense_gelu(x, gamma, beta, w_fn, b_fn, eps=eps)
    out_fused = jax.block_until_ready(out_fused)

    ref = fn(_layer_norm_reference(x, gamma, beta, eps=eps))
    assert out_fused.shape == (b, n, dim)
    # MXU / XLA default matmul precisions differ slightly; loose tolerance.
    assert jnp.allclose(out_fused, ref, atol=2e-2, rtol=2e-2), (
        float(jnp.max(jnp.abs(out_fused - ref))))

    # --- Generic path (standalone LayerNorm kernel, fn in plain JAX) --------
    out_generic = pre_norm(x, gamma, beta, fn, eps=eps)
    out_generic = jax.block_until_ready(out_generic)
    assert out_generic.shape == (b, n, dim)
    assert jnp.allclose(out_generic, ref, atol=1e-4, rtol=1e-4)

    # Standalone LayerNorm numerical check (tight).
    ln = jax.block_until_ready(layer_norm(x, gamma, beta, eps=eps))
    assert jnp.allclose(ln, _layer_norm_reference(x, gamma, beta, eps=eps),
                        atol=1e-5, rtol=1e-5)

    print("KERNEL_OK")
</pallas_src>

<mosaic_0001>
module attributes {stable_mosaic.version = 11 : i64} {
  func.func @_prenorm_dense_gelu_kernel(%arg0: i32, %arg1: i32, %arg2: memref<128x128xf32, #tpu.memory_space<vmem>>, %arg3: memref<1x128xf32, #tpu.memory_space<vmem>>, %arg4: memref<1x128xf32, #tpu.memory_space<vmem>>, %arg5: memref<128x128xf32, #tpu.memory_space<vmem>>, %arg6: memref<1x128xf32, #tpu.memory_space<vmem>>, %arg7: memref<128x128xf32, #tpu.memory_space<vmem>>, %arg8: memref<128x128xf32, #tpu.memory_space<vmem>>) attributes {dimension_semantics = [#tpu.dimension_semantics<parallel>, #tpu.dimension_semantics<arbitrary>], iteration_bounds = array<i64: 1, 1>, scalar_prefetch = 0 : i64, scratch_operands = 1 : i64, tpu.core_type = #tpu.core_type<tc>, window_params = [{transform_indices = @transform_0, window_bounds = array<i64: 128, 128>}, {pipeline_mode = #tpu.pipeline_mode<synchronous>, transform_indices = @transform_1, window_bounds = array<i64: 1, 128>}, {pipeline_mode = #tpu.pipeline_mode<synchronous>, transform_indices = @transform_2, window_bounds = array<i64: 1, 128>}, {transform_indices = @transform_3, window_bounds = array<i64: 128, 128>}, {transform_indices = @transform_4, window_bounds = array<i64: 1, 128>}, {transform_indices = @transform_5, window_bounds = array<i64: 128, 128>}]} {
    %c0_i32 = arith.constant 0 : i32
    %0 = arith.cmpi eq, %arg1, %c0_i32 : i32
    %1 = arith.extui %0 : i1 to i32
    %c0_i32_0 = arith.constant 0 : i32
    %2 = arith.cmpi ne, %1, %c0_i32_0 : i32
    scf.if %2 {
      %c0_12 = arith.constant 0 : index
      %c0_13 = arith.constant 0 : index
      %23 = vector.load %arg2[%c0_12, %c0_13] : memref<128x128xf32, #tpu.memory_space<vmem>>, vector<128x128xf32>
      %cst_14 = arith.constant dense<0.000000e+00> : vector<128xf32>
      %24 = vector.multi_reduction <add>, %23, %cst_14 [1] : vector<128x128xf32> to vector<128xf32>
      %25 = vector.shape_cast %24 : vector<128xf32> to vector<128x1xf32>
      %cst_15 = arith.constant 1.280000e+02 : f32
      %26 = vector.broadcast %cst_15 : f32 to vector<128x1xf32>
      %27 = arith.divf %25, %26 : vector<128x1xf32>
      %28 = vector.broadcast %27 : vector<128x1xf32> to vector<128x128xf32>
      %29 = arith.subf %23, %28 : vector<128x128xf32>
      %30 = arith.mulf %29, %29 : vector<128x128xf32>
      %cst_16 = arith.constant dense<0.000000e+00> : vector<128xf32>
      %31 = vector.multi_reduction <add>, %30, %cst_16 [1] : vector<128x128xf32> to vector<128xf32>
      %32 = vector.shape_cast %31 : vector<128xf32> to vector<128x1xf32>
      %cst_17 = arith.constant 1.280000e+02 : f32
      %33 = vector.broadcast %cst_17 : f32 to vector<128x1xf32>
      %34 = arith.divf %32, %33 : vector<128x1xf32>
      %cst_18 = arith.constant 9.99999974E-6 : f32
      %35 = vector.broadcast %cst_18 : f32 to vector<128x1xf32>
      %36 = arith.addf %34, %35 : vector<128x1xf32>
      %37 = math.rsqrt %36 : vector<128x1xf32>
      %38 = vector.broadcast %37 : vector<128x1xf32> to vector<128x128xf32>
      %39 = arith.mulf %29, %38 : vector<128x128xf32>
      %c0_19 = arith.constant 0 : index
      %c0_20 = arith.constant 0 : index
      %40 = vector.load %arg3[%c0_19, %c0_20] : memref<1x128xf32, #tpu.memory_space<vmem>>, vector<1x128xf32>
      %41 = vector.broadcast %40 : vector<1x128xf32> to vector<128x128xf32>
      %42 = arith.mulf %39, %41 : vector<128x128xf32>
      %c0_21 = arith.constant 0 : index
      %c0_22 = arith.constant 0 : index
      %43 = vector.load %arg4[%c0_21, %c0_22] : memref<1x128xf32, #tpu.memory_space<vmem>>, vector<1x128xf32>
      %44 = vector.broadcast %43 : vector<1x128xf32> to vector<128x128xf32>
      %45 = arith.addf %42, %44 : vector<128x128xf32>
      %c0_23 = arith.constant 0 : index
      %c0_24 = arith.constant 0 : index
      %46 = vector.load %arg8[%c0_23, %c0_24] : memref<128x128xf32, #tpu.memory_space<vmem>>, vector<128x128xf32>
      tpu.vector_store %arg8[%c0_23, %c0_24], %45 {strides = array<i32>} : memref<128x128xf32, #tpu.memory_space<vmem>>, vector<128x128xf32>,
    } else {
    }
    %c0 = arith.constant 0 : index
    %c0_1 = arith.constant 0 : index
    %3 = vector.load %arg8[%c0, %c0_1] : memref<128x128xf32, #tpu.memory_space<vmem>>, vector<128x128xf32>
    %c0_2 = arith.constant 0 : index
    %c0_3 = arith.constant 0 : index
    %4 = vector.load %arg5[%c0_2, %c0_3] : memref<128x128xf32, #tpu.memory_space<vmem>>, vector<128x128xf32>
    %cst = arith.constant dense<0.000000e+00> : vector<128x128xf32>
    %5 = tpu.matmul %3, %4, %cst {dimension_numbers = #tpu.dot_dimension_numbers<[1], [0], [0], [1], [0, 0, 1, 1], [], []>} : vector<128x128xf32>, vector<128x128xf32>, vector<128x128xf32> -> vector<128x128xf32>
    %c0_4 = arith.constant 0 : index
    %c0_5 = arith.constant 0 : index
    %6 = vector.load %arg6[%c0_4, %c0_5] : memref<1x128xf32, #tpu.memory_space<vmem>>, vector<1x128xf32>
    %7 = vector.broadcast %6 : vector<1x128xf32> to vector<128x128xf32>
    %8 = arith.addf %5, %7 : vector<128x128xf32>
    %9 = arith.mulf %8, %8 : vector<128x128xf32>
    %10 = arith.mulf %8, %9 : vector<128x128xf32>
    %cst_6 = arith.constant 4.471500e-02 : f32
    %11 = vector.broadcast %cst_6 : f32 to vector<128x128xf32>
    %12 = arith.mulf %11, %10 : vector<128x128xf32>
    %13 = arith.addf %8, %12 : vector<128x128xf32>
    %cst_7 = arith.constant 0.797884583 : f32
    %14 = vector.broadcast %cst_7 : f32 to vector<128x128xf32>
    %15 = arith.mulf %14, %13 : vector<128x128xf32>
    %16 = math.tanh %15 : vector<128x128xf32>
    %cst_8 = arith.constant 1.000000e+00 : f32
    %17 = vector.broadcast %cst_8 : f32 to vector<128x128xf32>
    %18 = arith.addf %17, %16 : vector<128x128xf32>
    %cst_9 = arith.constant 5.000000e-01 : f32
    %19 = vector.broadcast %cst_9 : f32 to vector<128x128xf32>
    %20 = arith.mulf %19, %18 : vector<128x128xf32>
    %21 = arith.mulf %8, %20 : vector<128x128xf32>
    %c0_10 = arith.constant 0 : index
    %c0_11 = arith.constant 0 : index
    %22 = vector.load %arg7[%c0_10, %c0_11] : memref<128x128xf32, #tpu.memory_space<vmem>>, vector<128x128xf32>
    tpu.vector_store %arg7[%c0_10, %c0_11], %21 {strides = array<i32>} : memref<128x128xf32, #tpu.memory_space<vmem>>, vector<128x128xf32>,
    return
  }
  func.func @transform_0(%arg0: i32, %arg1: i32) -> (i32, i32) {
    %c0_i32 = arith.constant 0 : i32
    %c0_i32_0 = arith.constant 0 : i32
    return %arg0, %c0_i32 : i32, i32
  }
  func.func @transform_1(%arg0: i32, %arg1: i32) -> (i32, i32) {
    %c0_i32 = arith.constant 0 : i32
    %c0_i32_0 = arith.constant 0 : i32
    %c0_i32_1 = arith.constant 0 : i32
    return %c0_i32, %c0_i32_0 : i32, i32
  }
  func.func @transform_2(%arg0: i32, %arg1: i32) -> (i32, i32) {
    %c0_i32 = arith.constant 0 : i32
    %c0_i32_0 = arith.constant 0 : i32
    %c0_i32_1 = arith.constant 0 : i32
    return %c0_i32, %c0_i32_0 : i32, i32
  }
  func.func @transform_3(%arg0: i32, %arg1: i32) -> (i32, i32) {
    %c0_i32 = arith.constant 0 : i32
    %c0_i32_0 = arith.constant 0 : i32
    return %c0_i32, %arg1 : i32, i32
  }
  func.func @transform_4(%arg0: i32, %arg1: i32) -> (i32, i32) {
    %c0_i32 = arith.constant 0 : i32
    %c0_i32_0 = arith.constant 0 : i32
    return %c0_i32, %arg1 : i32, i32
  }
  func.func @transform_5(%arg0: i32, %arg1: i32) -> (i32, i32) {
    %c0_i32 = arith.constant 0 : i32
    return %arg0, %arg1 : i32, i32
  }
}

</mosaic_0001>

<bundles_post_ra>
// kernel: tpu_custom_call.1
= control target key start
LH: loop header
LB: loop body
LE: loop exit
PB: predicated region body
PF: predicated region fallthrough
CT: control target
= control target key end

     0   :  { %10 = vsyncpa [#allocation4], 0  ;;  %s1268_s0 = inlined_call_operand.hbm [shape: f32[128,128], index: 0, kind: input, shape index: {}]   ;;  %s1269_s1 = inlined_call_operand.vmem [shape: f32[1,128], index: 1, kind: input, shape index: {}]   ;;  %s1270_s2 = inlined_call_operand.vmem [shape: f32[1,128], index: 2, kind: input, shape index: {}]   ;;  %s1271_s3 = inlined_call_operand.hbm [shape: f32[128,128], index: 3, kind: input, shape index: {}]   ;;  %s1272_s4 = inlined_call_operand.vmem [shape: f32[1,128], index: 4, kind: input, shape index: {}]   ;;  %s1273_s5 = inlined_call_operand.hbm [shape: f32[128,128], index: 5, kind: output, shape index: {}]  }
   0x1   :  { %11 = vsyncpa [#allocation7], 0 }
   0x2   :  { %12 = vsyncpa [#allocation5], 0  ;;  %s928_s18 = smov [#allocation3]  }
   0x3   :  { %s18_s19 = sshll.u32 %s928_s18, 4  ;;  %s19_s19 = int_to_ptr.vmem [resolvable:$true] %s18_s19 }
   0x4   :  { %s870_s20 = scalar_lea.vmem %s19_s19, 2048  ;;  %p875_p1 = scmp.lt.s32.totalorder %s19_s19, %s19_s19 }
   0x5   :  { %p871_p0 = scmp.ne.s32.totalorder %s19_s19, %s870_s20  ;;  %p876_p2 = scmp.lt.s32.totalorder %s870_s20, %s870_s20 }
   0x7   :  { %p877_p3 = por %p876_p2, %p875_p1 }
   0x9   :  { %p878_p4 = pnand %p877_p3, %p871_p0 }
   0xb   :  { %881 = shalt.err (!%p878_p4)
}
   0xc   :  { %s929_s21 = smov 128   ;;  %s930_s22 = smov 8  }
   0xd   :  { %24 = dma.hbm_to_vmem [thread:$0]  %s1268_s0, 2048, %s19_s19, [#allocation4], %s929_s21, %s929_s21, %s930_s22  }
   0xe   :  { %s931_s25 = smov [#allocation6]  }
   0xf   :  { %s34_s26 = sshll.u32 %s931_s25, 4  ;;  %s35_s26 = int_to_ptr.vmem [resolvable:$true] %s34_s26 }
  0x10   :  { %s890_s27 = scalar_lea.vmem %s35_s26, 2048  ;;  %p895_p6 = scmp.lt.s32.totalorder %s35_s26, %s35_s26 }
  0x11   :  { %p891_p5 = scmp.ne.s32.totalorder %s35_s26, %s890_s27  ;;  %p896_p7 = scmp.lt.s32.totalorder %s890_s27, %s890_s27 }
  0x13   :  { %p897_p8 = por %p896_p7, %p895_p6 }
  0x15   :  { %p898_p9 = pnand %p897_p8, %p891_p5 }
  0x17   :  { %901 = shalt.err (!%p898_p9)
}
  0x18   :  { %40 = dma.hbm_to_vmem [thread:$0]  %s1271_s3, 2048, %s35_s26, [#allocation7], %s929_s21, %s929_s21, %s930_s22  }
  0x19   :  { %922 = dma.done.wait [#allocation4], 2048  }
  0x1a   :  { %923 = vsyncadd [#allocation4], 4294965248 }
  0x1b   :  { %924 = dma.done.wait [#allocation7], 2048  }
  0x1c   :  { %925 = vsyncadd [#allocation7], 4294965248  ;;  %v53_v0 = vld [vmem:[#allocation3] sm:$0xff]  ;;  %v54_v1 = vld [vmem:[#allocation3 + $0x8] sm:$0xff] }
  0x1d   :  { %69 = vadd.xlane.f32.xlu0 %v53_v0  ;;  %71 = vadd.xlane.f32.xlu1 %v54_v1  ;;  %v61_v2 = vld [vmem:[#allocation3 + $0x40] sm:$0xff]  ;;  %v62_v3 = vld [vmem:[#allocation3 + $0x48] sm:$0xff]  ;;  %v55_v4 = vld [vmem:[#allocation3 + $0x10] sm:$0xff] }
  0x1e   :  { %v63_v5 = vld [vmem:[#allocation3 + $0x50] sm:$0xff]  ;;  %v56_v6 = vld [vmem:[#allocation3 + $0x18] sm:$0xff]  ;;  %v975_v8 = vld [vmem:[#allocation3 + $0x20] sm:$0xff] }
  0x1f   :  { %v64_v7 = vld [vmem:[#allocation3 + $0x58] sm:$0xff]  ;;  %v977_v9 = vld [vmem:[#allocation3 + $0x60] sm:$0xff]  ;;  %v981_v10 = vld [vmem:[#allocation3 + $0x28] sm:$0xff] }
  0x20   :  { %v983_v11 = vld [vmem:[#allocation3 + $0x68] sm:$0xff]  ;;  %v987_v12 = vld [vmem:[#allocation3 + $0x30] sm:$0xff]  ;;  %v993_v14 = vld [vmem:[#allocation3 + $0x38] sm:$0xff] }
  0x21   :  { %85 = vadd.xlane.f32.xlu0 %v61_v2  ;;  %87 = vadd.xlane.f32.xlu1 %v62_v3  ;;  %v989_v13 = vld [vmem:[#allocation3 + $0x70] sm:$0xff]  ;;  %v995_v15 = vld [vmem:[#allocation3 + $0x78] sm:$0xff]  ;;  %v337_v50 = vld [vmem:[#allocation6 + $0x68] sm:$0xff] }
  0x22   :  { %v339_v16 = vld [vmem:[#allocation6 + $0x78] sm:$0xff]  ;;  %v338_v17 = vld [vmem:[#allocation6 + $0x70] sm:$0xff]  ;;  %v336_v54 = vld [vmem:[#allocation6 + $0x60] sm:$0xff] }
  0x23   :  { %705 = vmatprep.subr.mxu0 %v339_v16  ;;  %761 = vmatprep.subr.mxu1 %v339_v16  ;;  %v335_v63 = vld [vmem:[#allocation6 + $0x58] sm:$0xff] }
  0x24   :  { %706 = vmatpush3.msra.mxu0 %v339_v16  ;;  %777 = vmatpush3.msra.mxu1 %v339_v16 }
  0x25   :  { %73 = vadd.xlane.f32.xlu0 %v55_v4  ;;  %89 = vadd.xlane.f32.xlu1 %v63_v5 }
  0x26   :  { %707 = vmatprep.subr.mxu0 %v338_v17  ;;  %762 = vmatprep.subr.mxu1 %v338_v17 }
  0x27   :  { %708 = vmatpush3.msra.mxu0 %v338_v17  ;;  %778 = vmatpush3.msra.mxu1 %v338_v17  ;;  %v332_v17 = vld [vmem:[#allocation6 + $0x40] sm:$0xff] }
  0x28   :  { %709 = vmatprep.subr.mxu0 %v337_v50  ;;  %763 = vmatprep.subr.mxu1 %v337_v50 }
  0x29   :  { %75 = vadd.xlane.f32.xlu0 %v56_v6  ;;  %91 = vadd.xlane.f32.xlu1 %v64_v7 }
  0x2a   :  { %710 = vmatpush3.msra.mxu0 %v337_v50  ;;  %779 = vmatpush3.msra.mxu1 %v337_v50 }
  0x2b   :  { %711 = vmatprep.subr.mxu0 %v336_v54  ;;  %764 = vmatprep.subr.mxu1 %v336_v54 }
  0x2c   :  { %712 = vmatpush3.msra.mxu0 %v336_v54  ;;  %780 = vmatpush3.msra.mxu1 %v336_v54 }
  0x2d   :  { %77 = vadd.xlane.f32.xlu0 %v975_v8  ;;  %93 = vadd.xlane.f32.xlu1 %v977_v9 }
  0x2e   :  { %713 = vmatprep.subr.mxu0 %v335_v63  ;;  %765 = vmatprep.subr.mxu1 %v335_v63 }
  0x2f   :  { %714 = vmatpush3.msra.mxu0 %v335_v63  ;;  %781 = vmatpush3.msra.mxu1 %v335_v63 }
  0x31   :  { %79 = vadd.xlane.f32.xlu0 %v981_v10  ;;  %95 = vadd.xlane.f32.xlu1 %v983_v11 }
  0x35   :  { %81 = vadd.xlane.f32.xlu0 %v987_v12  ;;  %97 = vadd.xlane.f32.xlu1 %v989_v13 }
  0x39   :  { %83 = vadd.xlane.f32.xlu0 %v993_v14  ;;  %99 = vadd.xlane.f32.xlu1 %v995_v15 }
  0xa6   :  { %v70_v18 = vpop.xlane.xlu0 %69  ;;  %v72_v19 = vpop.xlane.xlu1 %71 }
  0xa7   :  { %v102_v20 = vmul.f32 0.0078125, %v70_v18  ;;  %v103_v21 = vmul.f32 0.0078125, %v72_v19 }
  0xa9   :  { %v999_v22 = vsub.f32 %v53_v0, %v102_v20  ;;  %v1001_v23 = vsub.f32 %v54_v1, %v103_v21 }
  0xaa   :  { %v86_v24 = vpop.xlane.xlu0 %85  ;;  %v88_v25 = vpop.xlane.xlu1 %87 }
  0xab   :  { %v110_v26 = vmul.f32 0.0078125, %v86_v24  ;;  %v134_v27 = vmul.f32 %v999_v22, %v999_v22  ;;  %v111_v28 = vmul.f32 0.0078125, %v88_v25  ;;  %v135_v31 = vmul.f32 %v1001_v23, %v1001_v23 }
  0xad   :  { %v1005_v29 = vsub.f32 %v61_v2, %v110_v26  ;;  %150 = vadd.xlane.f32.xlu0 %v134_v27  ;;  %v1007_v30 = vsub.f32 %v62_v3, %v111_v28  ;;  %v334_v3 = vld [vmem:[#allocation6 + $0x50] sm:$0xff] }
  0xae   :  { %v74_v32 = vpop.xlane.xlu0 %73  ;;  %v90_v33 = vpop.xlane.xlu1 %89  ;;  %715 = vmatprep.subr.mxu0 %v334_v3  ;;  %766 = vmatprep.subr.mxu1 %v334_v3  ;;  %v330_v28 = vld [vmem:[#allocation6 + $0x30] sm:$0xff] }
  0xaf   :  { %v104_v34 = vmul.f32 0.0078125, %v74_v32  ;;  %v142_v35 = vmul.f32 %v1005_v29, %v1005_v29  ;;  %v112_v36 = vmul.f32 0.0078125, %v90_v33  ;;  %v143_v39 = vmul.f32 %v1007_v30, %v1007_v30  ;;  %716 = vmatpush3.msra.mxu0 %v334_v3  ;;  %782 = vmatpush3.msra.mxu1 %v334_v3  ;;  %v327_v32 = vld [vmem:[#allocation6 + $0x18] sm:$0xff]  ;;  %v326_v33 = vld [vmem:[#allocation6 + $0x10] sm:$0xff] }
  0xb1   :  { %v1013_v37 = vsub.f32 %v55_v4, %v104_v34  ;;  %152 = vadd.xlane.f32.xlu0 %v135_v31  ;;  %166 = vadd.xlane.f32.xlu1 %v142_v35  ;;  %v1015_v38 = vsub.f32 %v63_v5, %v112_v36  ;;  %v328_v31 = vld [vmem:[#allocation6 + $0x20] sm:$0xff]  ;;  %v325_v34 = vld [vmem:[#allocation6 + $0x8] sm:$0xff] }
  0xb2   :  { %v76_v40 = vpop.xlane.xlu0 %75  ;;  %v92_v41 = vpop.xlane.xlu1 %91  ;;  %v324_v35 = vld [vmem:[#allocation6] sm:$0xff] }
  0xb3   :  { %v105_v42 = vmul.f32 0.0078125, %v76_v40  ;;  %v136_v43 = vmul.f32 %v1013_v37, %v1013_v37  ;;  %v113_v44 = vmul.f32 0.0078125, %v92_v41  ;;  %v144_v47 = vmul.f32 %v1015_v38, %v1015_v38 }
  0xb5   :  { %v1021_v45 = vsub.f32 %v56_v6, %v105_v42  ;;  %168 = vadd.xlane.f32.xlu1 %v143_v39  ;;  %154 = vadd.xlane.f32.xlu0 %v136_v43  ;;  %v1023_v46 = vsub.f32 %v64_v7, %v113_v44 }
  0xb6   :  { %v78_v48 = vpop.xlane.xlu0 %77  ;;  %v94_v49 = vpop.xlane.xlu1 %93 }
  0xb7   :  { %v106_v51 = vmul.f32 0.0078125, %v78_v48  ;;  %v137_v52 = vmul.f32 %v1021_v45, %v1021_v45  ;;  %v114_v53 = vmul.f32 0.0078125, %v94_v49  ;;  %v145_v57 = vmul.f32 %v1023_v46, %v1023_v46 }
  0xb9   :  { %v1030_v55 = vsub.f32 %v975_v8, %v106_v51  ;;  %170 = vadd.xlane.f32.xlu1 %v144_v47  ;;  %156 = vadd.xlane.f32.xlu0 %v137_v52  ;;  %v1033_v56 = vsub.f32 %v977_v9, %v114_v53  ;;  %v333_v9 = vld [vmem:[#allocation6 + $0x48] sm:$0xff] }
  0xba   :  { %v80_v58 = vpop.xlane.xlu0 %79  ;;  %v96_v59 = vpop.xlane.xlu1 %95  ;;  %717 = vmatprep.subr.mxu0 %v333_v9  ;;  %767 = vmatprep.subr.mxu1 %v333_v9 }
  0xbb   :  { %v107_v60 = vmul.f32 0.0078125, %v80_v58  ;;  %v138_v61 = vmul.f32 %v1030_v55, %v1030_v55  ;;  %v115_v62 = vmul.f32 0.0078125, %v96_v59  ;;  %v146_v2 = vmul.f32 %v1033_v56, %v1033_v56  ;;  %718 = vmatpush3.msra.mxu0 %v333_v9  ;;  %783 = vmatpush3.msra.mxu1 %v333_v9 }
  0xbc   :  { %719 = vmatprep.subr.mxu0 %v332_v17  ;;  %768 = vmatprep.subr.mxu1 %v332_v17 }
  0xbd   :  { %v1040_v0 = vsub.f32 %v981_v10, %v107_v60  ;;  %172 = vadd.xlane.f32.xlu1 %v145_v57  ;;  %158 = vadd.xlane.f32.xlu0 %v138_v61  ;;  %v1043_v1 = vsub.f32 %v983_v11, %v115_v62 }
  0xbe   :  { %v82_v4 = vpop.xlane.xlu0 %81  ;;  %v98_v5 = vpop.xlane.xlu1 %97  ;;  %720 = vmatpush3.msra.mxu0 %v332_v17  ;;  %784 = vmatpush3.msra.mxu1 %v332_v17 }
  0xbf   :  { %v108_v6 = vmul.f32 0.0078125, %v82_v4  ;;  %v139_v7 = vmul.f32 %v1040_v0, %v1040_v0  ;;  %v116_v8 = vmul.f32 0.0078125, %v98_v5  ;;  %v147_v16 = vmul.f32 %v1043_v1, %v1043_v1 }
  0xc1   :  { %v1050_v10 = vsub.f32 %v987_v12, %v108_v6  ;;  %174 = vadd.xlane.f32.xlu1 %v146_v2  ;;  %160 = vadd.xlane.f32.xlu0 %v139_v7  ;;  %v1053_v11 = vsub.f32 %v989_v13, %v116_v8  ;;  %v331_v12 = vld [vmem:[#allocation6 + $0x38] sm:$0xff]  ;;  %v1074_v6 = vld [vmem:[%s1269_s1] ss:$0 sm:$0xff] }
  0xc2   :  { %v84_v18 = vpop.xlane.xlu0 %83  ;;  %v100_v19 = vpop.xlane.xlu1 %99  ;;  %721 = vmatprep.subr.mxu0 %v331_v12  ;;  %769 = vmatprep.subr.mxu1 %v331_v12 }
  0xc3   :  { %v109_v20 = vmul.f32 0.0078125, %v84_v18  ;;  %v140_v21 = vmul.f32 %v1050_v10, %v1050_v10  ;;  %v117_v24 = vmul.f32 0.0078125, %v100_v19  ;;  %v148_v26 = vmul.f32 %v1053_v11, %v1053_v11  ;;  %722 = vmatpush3.msra.mxu0 %v331_v12  ;;  %785 = vmatpush3.msra.mxu1 %v331_v12  ;;  %v1080_v18 = vld [vmem:[%s1270_s2] ss:$0 sm:$0xff] }
  0xc4   :  { %723 = vmatprep.subr.mxu0 %v330_v28  ;;  %770 = vmatprep.subr.mxu1 %v330_v28 }
  0xc5   :  { %v1060_v13 = vsub.f32 %v993_v14, %v109_v20  ;;  %176 = vadd.xlane.f32.xlu1 %v147_v16  ;;  %162 = vadd.xlane.f32.xlu0 %v140_v21  ;;  %v1063_v25 = vsub.f32 %v995_v15, %v117_v24  ;;  %v329_v15 = vld [vmem:[#allocation6 + $0x28] sm:$0xff] }
  0xc6   :  { %724 = vmatpush3.msra.mxu0 %v330_v28  ;;  %786 = vmatpush3.msra.mxu1 %v330_v28 }
  0xc7   :  { %v141_v27 = vmul.f32 %v1060_v13, %v1060_v13  ;;  %v149_v14 = vmul.f32 %v1063_v25, %v1063_v25  ;;  %725 = vmatprep.subr.mxu0 %v329_v15  ;;  %771 = vmatprep.subr.mxu1 %v329_v15 }
  0xc8   :  { %726 = vmatpush3.msra.mxu0 %v329_v15  ;;  %787 = vmatpush3.msra.mxu1 %v329_v15 }
  0xc9   :  { %178 = vadd.xlane.f32.xlu1 %v148_v26  ;;  %164 = vadd.xlane.f32.xlu0 %v141_v27 }
  0xca   :  { %727 = vmatprep.subr.mxu0 %v328_v31  ;;  %772 = vmatprep.subr.mxu1 %v328_v31 }
  0xcb   :  { %728 = vmatpush3.msra.mxu0 %v328_v31  ;;  %788 = vmatpush3.msra.mxu1 %v328_v31 }
  0xcc   :  { %729 = vmatprep.subr.mxu0 %v327_v32  ;;  %773 = vmatprep.subr.mxu1 %v327_v32 }
  0xcd   :  { %180 = vadd.xlane.f32.xlu1 %v149_v14  ;;  %730 = vmatpush3.msra.mxu0 %v327_v32 }
  0xce   :  { %731 = vmatprep.subr.mxu0 %v326_v33  ;;  %789 = vmatpush3.msra.mxu1 %v327_v32 }
  0xcf   :  { %732 = vmatpush3.msra.mxu0 %v326_v33  ;;  %774 = vmatprep.subr.mxu1 %v326_v33 }
  0xd0   :  { %733 = vmatprep.subr.mxu0 %v325_v34  ;;  %790 = vmatpush3.msra.mxu1 %v326_v33 }
  0xd1   :  { %734 = vmatpush3.msra.mxu0 %v325_v34  ;;  %775 = vmatprep.subr.mxu1 %v325_v34 }
  0xd2   :  { %735 = vmatprep.subr.mxu0 %v324_v35  ;;  %791 = vmatpush3.msra.mxu1 %v325_v34 }
  0xd3   :  { %736 = vmatpush3.msra.mxu0 %v324_v35  ;;  %776 = vmatprep.subr.mxu1 %v324_v35 }
  0xd4   :  { %792 = vmatpush3.msra.mxu1 %v324_v35 }
 0x136   :  { %v151_v36 = vpop.xlane.xlu0 %150 }
 0x137   :  { %v182_v39 = vmul.f32 0.0078125, %v151_v36 }
 0x139   :  { %v198_v40 = vadd.f32 1e-05, %v182_v39 }
 0x13a   :  { %v167_v41 = vpop.xlane.xlu1 %166  ;;  %v153_v42 = vpop.xlane.xlu0 %152 }
 0x13b   :  { %798 = vrsqrt.f32 %v198_v40  ;;  %v190_v43 = vmul.f32 0.0078125, %v167_v41  ;;  %v183_v44 = vmul.f32 0.0078125, %v153_v42 }
 0x13d   :  { %v206_v47 = vadd.f32 1e-05, %v190_v43  ;;  %v199_v48 = vadd.f32 1e-05, %v183_v44 }
 0x13e   :  { %v169_v49 = vpop.xlane.xlu1 %168  ;;  %v155_v50 = vpop.xlane.xlu0 %154 }
 0x13f   :  { %800 = vrsqrt.f32 %v206_v47  ;;  %v191_v51 = vmul.f32 0.0078125, %v169_v49  ;;  %v184_v52 = vmul.f32 0.0078125, %v155_v50 }
 0x140   :  { %802 = vrsqrt.f32 %v199_v48 }
 0x141   :  { %v207_v53 = vadd.f32 1e-05, %v191_v51  ;;  %v200_v54 = vadd.f32 1e-05, %v184_v52 }
 0x142   :  { %v171_v57 = vpop.xlane.xlu1 %170  ;;  %v157_v58 = vpop.xlane.xlu0 %156 }
 0x143   :  { %804 = vrsqrt.f32 %v207_v53  ;;  %v192_v59 = vmul.f32 0.0078125, %v171_v57  ;;  %v185_v60 = vmul.f32 0.0078125, %v157_v58 }
 0x144   :  { %806 = vrsqrt.f32 %v200_v54 }
 0x145   :  { %v208_v61 = vadd.f32 1e-05, %v192_v59  ;;  %v201_v62 = vadd.f32 1e-05, %v185_v60 }
 0x146   :  { %v173_v63 = vpop.xlane.xlu1 %172  ;;  %v159_v2 = vpop.xlane.xlu0 %158 }
 0x147   :  { %808 = vrsqrt.f32 %v208_v61  ;;  %v193_v3 = vmul.f32 0.0078125, %v173_v63  ;;  %v186_v4 = vmul.f32 0.0078125, %v159_v2 }
 0x148   :  { %v799_v5 = vpop.eup %798  ;;  %810 = vrsqrt.f32 %v201_v62 }
 0x149   :  { %v209_v7 = vadd.f32 1e-05, %v193_v3  ;;  %v202_v8 = vadd.f32 1e-05, %v186_v4  ;;  %v230_v9 = vmul.f32 %v799_v5, %v999_v22 }
 0x14a   :  { %v175_v16 = vpop.xlane.xlu1 %174  ;;  %v161_v17 = vpop.xlane.xlu0 %160 }
 0x14b   :  { %812 = vrsqrt.f32 %v209_v7  ;;  %v194_v19 = vmul.f32 0.0078125, %v175_v16  ;;  %v187_v20 = vmul.f32 0.0078125, %v161_v17  ;;  %v253_v21 = vmul.f32 %v1074_v6, %v230_v9 }
 0x14c   :  { %v801_v24 = vpop.eup %800  ;;  %814 = vrsqrt.f32 %v202_v8 }
 0x14d   :  { %v803_v12 = vpop.eup %802  ;;  %v210_v26 = vadd.f32 1e-05, %v194_v19  ;;  %v203_v27 = vadd.f32 1e-05, %v187_v20  ;;  %v276_v28 = vadd.f32 %v1080_v18, %v253_v21  ;;  %v238_v22 = vmul.f32 %v801_v24, %v1005_v29 }
 0x14e   :  { %v177_v14 = vpop.xlane.xlu1 %176  ;;  %v163_v15 = vpop.xlane.xlu0 %162  ;;  %v231_v31 = vmul.f32 %v803_v12, %v1001_v23 }
 0x14f   :  { %816 = vrsqrt.f32 %v210_v26  ;;  %v195_v32 = vmul.f32 0.0078125, %v177_v14  ;;  %v188_v33 = vmul.f32 0.0078125, %v163_v15  ;;  %737 = vmatprep.mubr.f32.mxu0 %v276_v28  ;;  %v261_v34 = vmul.f32 %v1074_v6, %v238_v22 }
 0x150   :  { %v805_v35 = vpop.eup %804  ;;  %818 = vrsqrt.f32 %v203_v27  ;;  %v254_v36 = vmul.f32 %v1074_v6, %v231_v31 }
 0x151   :  { %v807_v39 = vpop.eup %806  ;;  %v211_v40 = vadd.f32 1e-05, %v195_v32  ;;  %v204_v41 = vadd.f32 1e-05, %v188_v33  ;;  %v284_v42 = vadd.f32 %v1080_v18, %v261_v34  ;;  %v239_v29 = vmul.f32 %v805_v35, %v1007_v30 }
 0x152   :  { %v179_v43 = vpop.xlane.xlu1 %178  ;;  %v165_v44 = vpop.xlane.xlu0 %164  ;;  %v277_v23 = vadd.f32 %v1080_v18, %v254_v36  ;;  %v232_v47 = vmul.f32 %v807_v39, %v1013_v37 }
 0x153   :  { %820 = vrsqrt.f32 %v211_v40  ;;  %v196_v48 = vmul.f32 0.0078125, %v179_v43  ;;  %v189_v49 = vmul.f32 0.0078125, %v165_v44  ;;  %749 = vmatprep.mubr.f32.mxu1 %v284_v42  ;;  %v262_v50 = vmul.f32 %v1074_v6, %v239_v29 }
 0x154   :  { %v809_v51 = vpop.eup %808  ;;  %822 = vrsqrt.f32 %v204_v41  ;;  %738 = vmatmul.mubr.f32.vlgmr.msra.gmra.mxu0 %v277_v23  ;;  %v255_v52 = vmul.f32 %v1074_v6, %v232_v47 }
 0x155   :  { %v811_v53 = vpop.eup %810  ;;  %v212_v54 = vadd.f32 1e-05, %v196_v48  ;;  %v205_v30 = vadd.f32 1e-05, %v189_v49  ;;  %v285_v57 = vadd.f32 %v1080_v18, %v262_v50  ;;  %v240_v58 = vmul.f32 %v809_v51, %v1015_v38 }
 0x156   :  { %v181_v59 = vpop.xlane.xlu1 %180  ;;  %v278_v37 = vadd.f32 %v1080_v18, %v255_v52  ;;  %v233_v60 = vmul.f32 %v811_v53, %v1021_v45 }
 0x157   :  { %824 = vrsqrt.f32 %v212_v54  ;;  %v197_v61 = vmul.f32 0.0078125, %v181_v59  ;;  %750 = vmatmul.mubr.f32.vlgmr.msra.gmra.mxu1 %v285_v57  ;;  %v263_v62 = vmul.f32 %v1074_v6, %v240_v58 }
 0x158   :  { %v813_v63 = vpop.eup %812  ;;  %826 = vrsqrt.f32 %v205_v30  ;;  %740 = vmatprep.mubr.f32.mxu0 %v278_v37  ;;  %v256_v2 = vmul.f32 %v1074_v6, %v233_v60 }
 0x159   :  { %v815_v3 = vpop.eup %814  ;;  %v213_v4 = vadd.f32 1e-05, %v197_v61  ;;  %v286_v5 = vadd.f32 %v1080_v18, %v263_v62  ;;  %v241_v38 = vmul.f32 %v813_v63, %v1023_v46 }
 0x15a   :  { %v279_v7 = vadd.f32 %v1080_v18, %v256_v2  ;;  %v234_v45 = vmul.f32 %v815_v3, %v1030_v55 }
 0x15b   :  { %828 = vrsqrt.f32 %v213_v4  ;;  %752 = vmatprep.mubr.f32.mxu1 %v286_v5  ;;  %v264_v8 = vmul.f32 %v1074_v6, %v241_v38 }
 0x15c   :  { %v817_v9 = vpop.eup %816  ;;  %741 = vmatmul.mubr.f32.gmra.mxu0 %v279_v7  ;;  %v257_v16 = vmul.f32 %v1074_v6, %v234_v45 }
 0x15d   :  { %v819_v17 = vpop.eup %818  ;;  %v287_v19 = vadd.f32 %v1080_v18, %v264_v8  ;;  %v242_v20 = vmul.f32 %v817_v9, %v1033_v56 }
 0x15e   :  { %v280_v21 = vadd.f32 %v1080_v18, %v257_v16  ;;  %v235_v46 = vmul.f32 %v819_v17, %v1040_v0 }
 0x15f   :  { %753 = vmatmul.mubr.f32.gmra.mxu1 %v287_v19  ;;  %v265_v55 = vmul.f32 %v1074_v6, %v242_v20 }
 0x160   :  { %v821_v24 = vpop.eup %820  ;;  %743 = vmatprep.mubr.f32.mxu0 %v280_v21  ;;  %v258_v12 = vmul.f32 %v1074_v6, %v235_v46 }
 0x161   :  { %v823_v26 = vpop.eup %822  ;;  %v288_v27 = vadd.f32 %v1080_v18, %v265_v55  ;;  %v243_v28 = vmul.f32 %v821_v24, %v1043_v1 }
 0x162   :  { %v281_v22 = vadd.f32 %v1080_v18, %v258_v12  ;;  %v236_v56 = vmul.f32 %v823_v26, %v1050_v10 }
 0x163   :  { %755 = vmatprep.mubr.f32.mxu1 %v288_v27  ;;  %v266_v14 = vmul.f32 %v1074_v6, %v243_v28 }
 0x164   :  { %v825_v0 = vpop.eup %824  ;;  %744 = vmatmul.mubr.f32.gmra.mxu0 %v281_v22  ;;  %v259_v15 = vmul.f32 %v1074_v6, %v236_v56 }
 0x165   :  { %v827_v31 = vpop.eup %826  ;;  %v289_v32 = vadd.f32 %v1080_v18, %v266_v14  ;;  %v244_v33 = vmul.f32 %v825_v0, %v1053_v11 }
 0x166   :  { %v282_v34 = vadd.f32 %v1080_v18, %v259_v15  ;;  %v237_v1 = vmul.f32 %v827_v31, %v1060_v13  ;;  %v1132_v13 = vld [vmem:[%s1272_s4] ss:$0 sm:$0xff]  ;;  %s932_s4 = smov [#allocation8]  }
 0x167   :  { %756 = vmatmul.mubr.f32.gmra.mxu1 %v289_v32  ;;  %v267_v35 = vmul.f32 %v1074_v6, %v244_v33  ;;  %s657_s7 = sshll.u32 %s932_s4, 4  ;;  %s658_s7 = int_to_ptr.vmem [resolvable:$true] %s657_s7 }
 0x168   :  { %v829_v10 = vpop.eup %828  ;;  %746 = vmatprep.mubr.f32.mxu0 %v282_v34  ;;  %v260_v36 = vmul.f32 %v1074_v6, %v237_v1  ;;  %s902_s8 = scalar_lea.vmem %s658_s7, 2048  ;;  %p907_p11 = scmp.lt.s32.totalorder %s658_s7, %s658_s7 }
 0x169   :  { %v290_v39 = vadd.f32 %v1080_v18, %v267_v35  ;;  %v245_v40 = vmul.f32 %v829_v10, %v1063_v25  ;;  %p903_p10 = scmp.ne.s32.totalorder %s658_s7, %s902_s8  ;;  %p908_p12 = scmp.lt.s32.totalorder %s902_s8, %s902_s8 }
 0x16a   :  { %v283_v41 = vadd.f32 %v1080_v18, %v260_v36 }
 0x16b   :  { %758 = vmatprep.mubr.f32.mxu1 %v290_v39  ;;  %v268_v11 = vmul.f32 %v1074_v6, %v245_v40  ;;  %p909_p13 = por %p908_p12, %p907_p11 }
 0x16c   :  { %747 = vmatmul.mubr.f32.gmra.mxu0 %v283_v41 }
 0x16d   :  { %v291_v42 = vadd.f32 %v1080_v18, %v268_v11  ;;  %p910_p0 = pnand %p909_p13, %p903_p10 }
 0x16f   :  { %759 = vmatmul.mubr.f32.gmra.mxu1 %v291_v42 }
 0x214   :  { %v739_v29 = vpop.f32.mrf.mxu0 }
 0x215   :  { %v1135_v43 = vadd.f32 %v739_v29, %v1132_v13 }
 0x216   :  { %v413_v44 = vpop.f32.mrf.mxu0 }
 0x217   :  { %v493_v25 = vmul.f32 %v1135_v43, %v1135_v43  ;;  %v1140_v23 = vadd.f32 %v1132_v13, %v413_v44  ;;  %v751_v6 = vpop.f32.mrf.mxu1 }
 0x218   :  { %v1143_v18 = vadd.f32 %v751_v6, %v1132_v13 }
 0x219   :  { %v509_v47 = vmul.f32 %v493_v25, %v1135_v43  ;;  %v492_v48 = vmul.f32 %v1140_v23, %v1140_v23  ;;  %v453_v49 = vpop.f32.mrf.mxu1 }
 0x21a   :  { %v501_v50 = vmul.f32 %v1143_v18, %v1143_v18  ;;  %v1151_v51 = vadd.f32 %v1132_v13, %v453_v49 }
 0x21b   :  { %v525_v52 = vmul.f32 0.044715, %v509_v47  ;;  %v508_v53 = vmul.f32 %v492_v48, %v1140_v23 }
 0x21c   :  { %v517_v54 = vmul.f32 %v501_v50, %v1143_v18  ;;  %v500_v30 = vmul.f32 %v1151_v51, %v1151_v51  ;;  %v742_v57 = vpop.f32.mrf.mxu0 }
 0x21d   :  { %v541_v58 = vadd.f32 %v525_v52, %v1135_v43  ;;  %v524_v59 = vmul.f32 0.044715, %v508_v53  ;;  %v1159_v37 = vadd.f32 %v742_v57, %v1132_v13 }
 0x21e   :  { %v533_v60 = vmul.f32 0.044715, %v517_v54  ;;  %v516_v61 = vmul.f32 %v500_v30, %v1151_v51  ;;  %v423_v62 = vpop.f32.mrf.mxu0 }
 0x21f   :  { %v557_v63 = vmul.f32 0.7978846, %v541_v58  ;;  %v540_v2 = vadd.f32 %v524_v59, %v1140_v23  ;;  %v495_v3 = vmul.f32 %v1159_v37, %v1159_v37  ;;  %v1166_v4 = vadd.f32 %v1132_v13, %v423_v62  ;;  %v754_v5 = vpop.f32.mrf.mxu1 }
 0x220   :  { %v549_v38 = vadd.f32 %v533_v60, %v1143_v18  ;;  %v532_v7 = vmul.f32 0.044715, %v516_v61  ;;  %v1170_v45 = vadd.f32 %v754_v5, %v1132_v13 }
 0x221   :  { %830 = vtanh.f32 %v557_v63  ;;  %v556_v8 = vmul.f32 0.7978846, %v540_v2  ;;  %v511_v9 = vmul.f32 %v495_v3, %v1159_v37  ;;  %v494_v16 = vmul.f32 %v1166_v4, %v1166_v4  ;;  %v463_v17 = vpop.f32.mrf.mxu1 }
 0x222   :  { %v565_v19 = vmul.f32 0.7978846, %v549_v38  ;;  %v548_v20 = vadd.f32 %v532_v7, %v1151_v51  ;;  %v503_v21 = vmul.f32 %v1170_v45, %v1170_v45  ;;  %v1179_v46 = vadd.f32 %v1132_v13, %v463_v17 }
 0x223   :  { %832 = vtanh.f32 %v556_v8  ;;  %v527_v55 = vmul.f32 0.044715, %v511_v9  ;;  %v510_v24 = vmul.f32 %v494_v16, %v1166_v4 }
 0x224   :  { %834 = vtanh.f32 %v565_v19  ;;  %v564_v12 = vmul.f32 0.7978846, %v548_v20  ;;  %v519_v26 = vmul.f32 %v503_v21, %v1170_v45  ;;  %v502_v27 = vmul.f32 %v1179_v46, %v1179_v46  ;;  %v745_v28 = vpop.f32.mrf.mxu0 }
 0x225   :  { %v543_v22 = vadd.f32 %v527_v55, %v1159_v37  ;;  %v526_v56 = vmul.f32 0.044715, %v510_v24  ;;  %v1187_v14 = vadd.f32 %v745_v28, %v1132_v13 }
 0x226   :  { %836 = vtanh.f32 %v564_v12  ;;  %v535_v0 = vmul.f32 0.044715, %v519_v26  ;;  %v518_v15 = vmul.f32 %v502_v27, %v1179_v46  ;;  %v433_v31 = vpop.f32.mrf.mxu0 }
 0x227   :  { %v559_v32 = vmul.f32 0.7978846, %v543_v22  ;;  %v542_v33 = vadd.f32 %v526_v56, %v1166_v4  ;;  %v497_v34 = vmul.f32 %v1187_v14, %v1187_v14  ;;  %v1194_v1 = vadd.f32 %v1132_v13, %v433_v31  ;;  %v757_v35 = vpop.f32.mrf.mxu1 }
 0x228   :  { %v551_v10 = vadd.f32 %v535_v0, %v1170_v45  ;;  %v534_v36 = vmul.f32 0.044715, %v518_v15  ;;  %v1198_v39 = vadd.f32 %v757_v35, %v1132_v13 }
 0x229   :  { %838 = vtanh.f32 %v559_v32  ;;  %v558_v40 = vmul.f32 0.7978846, %v542_v33  ;;  %v513_v41 = vmul.f32 %v497_v34, %v1187_v14  ;;  %v496_v11 = vmul.f32 %v1194_v1, %v1194_v1  ;;  %v473_v42 = vpop.f32.mrf.mxu1 }
 0x22a   :  { %v567_v29 = vmul.f32 0.7978846, %v551_v10  ;;  %v550_v44 = vadd.f32 %v534_v36, %v1179_v46  ;;  %v505_v25 = vmul.f32 %v1198_v39, %v1198_v39  ;;  %v1207_v6 = vadd.f32 %v1132_v13, %v473_v42 }
 0x22b   :  { %840 = vtanh.f32 %v558_v40  ;;  %v529_v47 = vmul.f32 0.044715, %v513_v41  ;;  %v512_v48 = vmul.f32 %v496_v11, %v1194_v1 }
 0x22c   :  { %842 = vtanh.f32 %v567_v29  ;;  %v566_v49 = vmul.f32 0.7978846, %v550_v44  ;;  %v521_v50 = vmul.f32 %v505_v25, %v1198_v39  ;;  %v504_v52 = vmul.f32 %v1207_v6, %v1207_v6  ;;  %v748_v53 = vpop.f32.mrf.mxu0 }
 0x22d   :  { %v545_v54 = vadd.f32 %v529_v47, %v1187_v14  ;;  %v528_v30 = vmul.f32 0.044715, %v512_v48  ;;  %v1215_v57 = vadd.f32 %v748_v53, %v1132_v13 }
 0x22e   :  { %v831_v58 = vpop.eup %830  ;;  %844 = vtanh.f32 %v566_v49  ;;  %v537_v59 = vmul.f32 0.044715, %v521_v50  ;;  %v520_v60 = vmul.f32 %v504_v52, %v1207_v6  ;;  %v443_v61 = vpop.f32.mrf.mxu0 }
 0x22f   :  { %v589_v62 = vadd.f32 1.0, %v831_v58  ;;  %v561_v63 = vmul.f32 0.7978846, %v545_v54  ;;  %v544_v2 = vadd.f32 %v528_v30, %v1194_v1  ;;  %v499_v3 = vmul.f32 %v1215_v57, %v1215_v57  ;;  %v760_v5 = vpop.f32.mrf.mxu1 }
 0x230   :  { %v833_v38 = vpop.eup %832  ;;  %v553_v7 = vadd.f32 %v537_v59, %v1198_v39  ;;  %v536_v8 = vmul.f32 0.044715, %v520_v60  ;;  %v1223_v9 = vadd.f32 %v1132_v13, %v443_v61  ;;  %v1226_v16 = vadd.f32 %v760_v5, %v1132_v13 }
 0x231   :  { %v835_v17 = vpop.eup %834  ;;  %v605_v19 = vmul.f32 0.5, %v589_v62  ;;  %v588_v20 = vadd.f32 1.0, %v833_v38  ;;  %846 = vtanh.f32 %v561_v63  ;;  %v560_v21 = vmul.f32 0.7978846, %v544_v2  ;;  %v483_v0 = vpop.f32.mrf.mxu1 }
 0x232   :  { %v597_v55 = vadd.f32 1.0, %v835_v17  ;;  %v569_v24 = vmul.f32 0.7978846, %v553_v7  ;;  %v552_v12 = vadd.f32 %v536_v8, %v1207_v6  ;;  %v515_v26 = vmul.f32 %v499_v3, %v1215_v57 }
 0x233   :  { %v837_v27 = vpop.eup %836  ;;  %v621_v28 = vmul.f32 %v605_v19, %v1135_v43  ;;  %v604_v22 = vmul.f32 0.5, %v588_v20  ;;  %848 = vtanh.f32 %v560_v21  ;;  %v498_v56 = vmul.f32 %v1223_v9, %v1223_v9 }
 0x234   :  { %v613_v15 = vmul.f32 0.5, %v597_v55  ;;  %v596_v31 = vadd.f32 1.0, %v837_v27  ;;  %850 = vtanh.f32 %v569_v24  ;;  %v568_v32 = vmul.f32 0.7978846, %v552_v12 }
 0x235   :  { %637 = vst [vmem:[#allocation8 + $0x8] sm:$0xff] %v621_v28  ;;  %v620_v33 = vmul.f32 %v604_v22, %v1140_v23  ;;  %v531_v34 = vmul.f32 0.044715, %v515_v26  ;;  %v514_v35 = vmul.f32 %v498_v56, %v1223_v9  ;;  %v507_v10 = vmul.f32 %v1226_v16, %v1226_v16 }
 0x236   :  { %v839_v43 = vpop.eup %838  ;;  %v629_v36 = vmul.f32 %v613_v15, %v1143_v18  ;;  %v612_v40 = vmul.f32 0.5, %v596_v31  ;;  %852 = vtanh.f32 %v568_v32  ;;  %v1239_v41 = vadd.f32 %v1132_v13, %v483_v0 }
 0x237   :  { %636 = vst [vmem:[#allocation8] sm:$0xff] %v620_v33  ;;  %v591_v11 = vadd.f32 1.0, %v839_v43  ;;  %v547_v42 = vadd.f32 %v531_v34, %v1215_v57  ;;  %v530_v29 = vmul.f32 0.044715, %v514_v35  ;;  %v523_v23 = vmul.f32 %v507_v10, %v1226_v16 }
 0x238   :  { %v841_v44 = vpop.eup %840  ;;  %645 = vst [vmem:[#allocation8 + $0x48] sm:$0xff] %v629_v36  ;;  %v628_v25 = vmul.f32 %v612_v40, %v1151_v51  ;;  %v506_v47 = vmul.f32 %v1239_v41, %v1239_v41 }
 0x239   :  { %v843_v18 = vpop.eup %842  ;;  %v607_v48 = vmul.f32 0.5, %v591_v11  ;;  %v590_v49 = vadd.f32 1.0, %v841_v44  ;;  %v563_v50 = vmul.f32 0.7978846, %v547_v42  ;;  %v546_v13 = vadd.f32 %v530_v29, %v1223_v9 }
 0x23a   :  { %644 = vst [vmem:[#allocation8 + $0x40] sm:$0xff] %v628_v25  ;;  %v599_v52 = vadd.f32 1.0, %v843_v18  ;;  %v539_v53 = vmul.f32 0.044715, %v523_v23  ;;  %v522_v54 = vmul.f32 %v506_v47, %v1239_v41 }
 0x23b   :  { %v845_v30 = vpop.eup %844  ;;  %v623_v58 = vmul.f32 %v607_v48, %v1159_v37  ;;  %v606_v59 = vmul.f32 0.5, %v590_v49  ;;  %854 = vtanh.f32 %v563_v50  ;;  %v562_v51 = vmul.f32 0.7978846, %v546_v13 }
 0x23c   :  { %v615_v60 = vmul.f32 0.5, %v599_v52  ;;  %v598_v61 = vadd.f32 1.0, %v845_v30  ;;  %v555_v62 = vadd.f32 %v539_v53, %v1226_v16  ;;  %v538_v63 = vmul.f32 0.044715, %v522_v54 }
 0x23d   :  { %639 = vst [vmem:[#allocation8 + $0x18] sm:$0xff] %v623_v58  ;;  %v622_v2 = vmul.f32 %v606_v59, %v1166_v4  ;;  %856 = vtanh.f32 %v562_v51 }
 0x23e   :  { %v847_v3 = vpop.eup %846  ;;  %v631_v5 = vmul.f32 %v615_v60, %v1170_v45  ;;  %v614_v38 = vmul.f32 0.5, %v598_v61  ;;  %v571_v7 = vmul.f32 0.7978846, %v555_v62  ;;  %v554_v8 = vadd.f32 %v538_v63, %v1239_v41 }
 0x23f   :  { %638 = vst [vmem:[#allocation8 + $0x10] sm:$0xff] %v622_v2  ;;  %v593_v37 = vadd.f32 1.0, %v847_v3 }
 0x240   :  { %v849_v17 = vpop.eup %848  ;;  %647 = vst [vmem:[#allocation8 + $0x58] sm:$0xff] %v631_v5  ;;  %v630_v19 = vmul.f32 %v614_v38, %v1179_v46  ;;  %858 = vtanh.f32 %v571_v7  ;;  %v570_v20 = vmul.f32 0.7978846, %v554_v8 }
 0x241   :  { %v851_v21 = vpop.eup %850  ;;  %v609_v55 = vmul.f32 0.5, %v593_v37  ;;  %v592_v24 = vadd.f32 1.0, %v849_v17 }
 0x242   :  { %646 = vst [vmem:[#allocation8 + $0x50] sm:$0xff] %v630_v19  ;;  %v601_v4 = vadd.f32 1.0, %v851_v21  ;;  %860 = vtanh.f32 %v570_v20 }
 0x243   :  { %v853_v12 = vpop.eup %852  ;;  %v625_v45 = vmul.f32 %v609_v55, %v1187_v14  ;;  %v608_v26 = vmul.f32 0.5, %v592_v24 }
 0x244   :  { %v617_v27 = vmul.f32 0.5, %v601_v4  ;;  %v600_v28 = vadd.f32 1.0, %v853_v12 }
 0x245   :  { %641 = vst [vmem:[#allocation8 + $0x28] sm:$0xff] %v625_v45  ;;  %v624_v22 = vmul.f32 %v608_v26, %v1194_v1 }
 0x246   :  { %v633_v56 = vmul.f32 %v617_v27, %v1198_v39  ;;  %v616_v46 = vmul.f32 0.5, %v600_v28 }
 0x247   :  { %640 = vst [vmem:[#allocation8 + $0x20] sm:$0xff] %v624_v22 }
 0x248   :  { %v855_v0 = vpop.eup %854  ;;  %649 = vst [vmem:[#allocation8 + $0x68] sm:$0xff] %v633_v56  ;;  %v632_v15 = vmul.f32 %v616_v46, %v1207_v6 }
 0x249   :  { %v595_v31 = vadd.f32 1.0, %v855_v0 }
 0x24a   :  { %v857_v32 = vpop.eup %856  ;;  %648 = vst [vmem:[#allocation8 + $0x60] sm:$0xff] %v632_v15 }
 0x24b   :  { %v611_v33 = vmul.f32 0.5, %v595_v31  ;;  %v594_v34 = vadd.f32 1.0, %v857_v32 }
 0x24d   :  { %v859_v14 = vpop.eup %858  ;;  %v627_v35 = vmul.f32 %v611_v33, %v1215_v57  ;;  %v610_v10 = vmul.f32 0.5, %v594_v34 }
 0x24e   :  { %v603_v43 = vadd.f32 1.0, %v859_v14 }
 0x24f   :  { %v861_v36 = vpop.eup %860  ;;  %643 = vst [vmem:[#allocation8 + $0x38] sm:$0xff] %v627_v35  ;;  %v626_v1 = vmul.f32 %v610_v10, %v1223_v9 }
 0x250   :  { %v619_v39 = vmul.f32 0.5, %v603_v43  ;;  %v602_v40 = vadd.f32 1.0, %v861_v36 }
 0x251   :  { %642 = vst [vmem:[#allocation8 + $0x30] sm:$0xff] %v626_v1 }
 0x252   :  { %v635_v6 = vmul.f32 %v619_v39, %v1226_v16  ;;  %v618_v11 = vmul.f32 0.5, %v602_v40 }
 0x254   :  { %651 = vst [vmem:[#allocation8 + $0x78] sm:$0xff] %v635_v6  ;;  %v634_v42 = vmul.f32 %v618_v11, %v1239_v41 }
 0x256   :  { %650 = vst [vmem:[#allocation8 + $0x70] sm:$0xff] %v634_v42 }
 0x257   :  { %913 = shalt.err (!%p910_p0)
}
 0x258   :  { %663 = dma.vmem_to_hbm [thread:$0]  %s658_s7, 2048, %s1273_s5, [#allocation5], %s929_s21, %s929_s21, %s930_s22  }
 0x259   :  { %926 = dma.done.wait [#allocation5], 2048  }
 0x25a   :  { %927 = vsyncadd [#allocation5], 4294965248 }
 0x25b   :  { %667 = vsyncpa [#allocation4], 1 }
 0x25c   :  { %668 = vsyncpa [#allocation7], 1 }
 0x25d   :  { %669 = vsyncpa [#allocation5], 1 }

</bundles_post_ra>
